<compile_context>
chip_gen: v7x
topology: tpu7x:2x2x1
jax: 0.10.0
libtpu: 0.0.40
codegen_flags: <defaults>
</compile_context>

<pallas_src>
import functools
import math

import jax
import jax.numpy as jnp
from jax.experimental import pallas as pl
from jax.experimental.pallas import tpu as pltpu


# ----------------------------- helpers -----------------------------

def _pick_tile(dim, pref, step):
    """Largest multiple of `step` <= pref that divides dim; else the full dim."""
    if dim <= pref or dim % step != 0:
        return dim
    t = (pref // step) * step
    while t >= step:
        if dim % t == 0:
            return t
        t -= step
    return dim


def _default_vmem_limit():
    try:
        cap = pltpu.get_tpu_info().vmem_capacity_bytes
        return int(max(min(cap * 3 // 4, 96 * 1024 * 1024), 32 * 1024 * 1024))
    except Exception:
        return 32 * 1024 * 1024


_VMEM_LIMIT = _default_vmem_limit()


# ===================== fused (LN) + linear (+act) (+residual) =====================

def _fused_linear_kernel(*refs, has_ln, act_kind, has_res, eps, nk):
    j = pl.program_id(1)
    k = pl.program_id(2)

    idx = 0
    x_ref = refs[idx]; idx += 1
    if has_ln:
        g_ref = refs[idx]; bln_ref = refs[idx + 1]; idx += 2
    w_ref = refs[idx]; idx += 1
    b_ref = refs[idx]; idx += 1
    if has_res:
        res_ref = refs[idx]; idx += 1
    o_ref = refs[idx]; idx += 1
    acc_ref = refs[idx]; idx += 1
    ln_ref = refs[idx] if has_ln else None

    if has_ln:
        # LayerNorm once per row tile (j==0, k==0); reused for all output
        # column tiles j.  fp32 math matches the fp16-safe LayerNorm subclass.
        @pl.when((j == 0) & (k == 0))
        def _():
            xf = x_ref[...].astype(jnp.float32)
            mu = jnp.mean(xf, axis=-1, keepdims=True)
            var = jnp.mean(jnp.square(xf - mu), axis=-1, keepdims=True)
            xn = (xf - mu) * jax.lax.rsqrt(var + eps)
            ln_ref[...] = (xn * g_ref[...] + bln_ref[...]).astype(ln_ref.dtype)
        lhs = ln_ref[...]
    else:
        lhs = x_ref[...]

    @pl.when(k == 0)
    def _():
        acc_ref[...] = jnp.zeros_like(acc_ref)

    acc_ref[...] += jnp.dot(lhs, w_ref[...], preferred_element_type=jnp.float32)

    @pl.when(k == nk - 1)
    def _():
        y = acc_ref[...] + b_ref[...].astype(jnp.float32)
        if act_kind == "quick_gelu":
            y = y * jax.nn.sigmoid(1.702 * y)
        elif act_kind == "gelu":
            # TODO(synk): MONAI ViT uses exact (erf) GELU; tanh approximation here.
            y = jax.nn.gelu(y, approximate=True)
        if has_res:
            y = y + res_ref[...].astype(jnp.float32)
        o_ref[...] = y.astype(o_ref.dtype)


def fused_linear(x2d, w, b, *, ln_g=None, ln_b=None, act=None, residual=None,
                 eps=1e-5, tm_pref=256, tn_pref=256, tk_pref=256):
    """y = act(LN(x) @ w + b) + residual, tiled over (M, N, K)."""
    M, K = x2d.shape
    K2, N = w.shape
    assert K == K2

    has_ln = ln_g is not None
    has_res = residual is not None

    row_step = 16 if jnp.dtype(x2d.dtype).itemsize < 4 else 8
    tm = _pick_tile(M, tm_pref, row_step)
    tn = _pick_tile(N, tn_pref, 128)
    # LN needs the full row to compute mean/var, so LN-fused layers keep full K
    # (those layers have K == width).  No-LN layers (e.g. MLP proj, K = 4*width)
    # get a real K grid axis so VMEM footprint is decoupled from K.
    tk = K if has_ln else _pick_tile(K, tk_pref, 128)
    nk = K // tk
    grid = (M // tm, N // tn, nk)

    in_specs = []
    inputs = []
    if has_ln:
        in_specs.append(pl.BlockSpec((tm, K), lambda i, j, k: (i, 0)))
    else:
        in_specs.append(pl.BlockSpec((tm, tk), lambda i, j, k: (i, k)))
    inputs.append(x2d)
    if has_ln:
        in_specs += [pl.BlockSpec((1, K), lambda i, j, k: (0, 0)),
                     pl.BlockSpec((1, K), lambda i, j, k: (0, 0))]
        inputs += [ln_g.reshape(1, K), ln_b.reshape(1, K)]
    in_specs += [pl.BlockSpec((tk, tn), lambda i, j, k: (k, j)),
                 pl.BlockSpec((1, tn), lambda i, j, k: (0, j))]
    inputs += [w, b.reshape(1, N)]
    if has_res:
        in_specs.append(pl.BlockSpec((tm, tn), lambda i, j, k: (i, j)))
        inputs.append(residual)

    scratch = [pltpu.VMEM((tm, tn), jnp.float32)]
    if has_ln:
        scratch.append(pltpu.VMEM((tm, K), x2d.dtype))

    itemsize = jnp.dtype(x2d.dtype).itemsize
    cost = pl.CostEstimate(
        flops=2 * M * N * K,
        transcendentals=(M * N) if act else 0,
        bytes_accessed=itemsize * (M * K + (M // tm) * K * N
                                   + (2 if has_res else 1) * M * N))

    return pl.pallas_call(
        functools.partial(_fused_linear_kernel, has_ln=has_ln, act_kind=act,
                          has_res=has_res, eps=eps, nk=nk),
        out_shape=jax.ShapeDtypeStruct((M, N), x2d.dtype),
        grid=grid,
        in_specs=in_specs,
        out_specs=pl.BlockSpec((tm, tn), lambda i, j, k: (i, j)),
        scratch_shapes=scratch,
        compiler_params=pltpu.CompilerParams(
            dimension_semantics=("parallel", "arbitrary", "arbitrary"),
            vmem_limit_bytes=_VMEM_LIMIT),
        cost_estimate=cost,
    )(*inputs)


# ============================ multi-head attention ============================

def _attn_kernel(q_ref, k_ref, v_ref, o_ref, *, hpg, dh, offs, scale, causal):
    L = q_ref.shape[1]
    qo, ko, vo = offs

    if causal:
        row = jax.lax.broadcasted_iota(jnp.int32, (L, L), 0)
        col = jax.lax.broadcasted_iota(jnp.int32, (L, L), 1)
        # large finite negative (not -inf) so a hypothetical fully-masked row
        # cannot NaN; diagonal is always unmasked here anyway.
        neg = jnp.where(col > row, jnp.float32(-1e30), jnp.float32(0.0))

    for h in range(hpg):                                   # static, small unroll
        q = q_ref[0, :, qo + h * dh: qo + (h + 1) * dh]
        k = k_ref[0, :, ko + h * dh: ko + (h + 1) * dh]
        v = v_ref[0, :, vo + h * dh: vo + (h + 1) * dh]
        # q @ k^T via contracting dims (no explicit transpose / VMEM copy).
        s = jax.lax.dot_general(q, k, (((1,), (1,)), ((), ())),
                                preferred_element_type=jnp.float32) * scale
        if causal:
            s = s + neg
        m = jnp.max(s, axis=-1, keepdims=True)
        p = jnp.exp(s - m)
        l = jnp.sum(p, axis=-1, keepdims=True)
        o_h = jnp.dot(p.astype(v.dtype), v, preferred_element_type=jnp.float32)
        o_h = o_h * pl.reciprocal(l, approx=True)          # EUP, off the VALU path
        # Store each head directly into its lane strip — no concatenate.
        o_ref[0, :, h * dh:(h + 1) * dh] = o_h.astype(o_ref.dtype)


def _head_group(n_head, dh):
    """Largest head-group whose lane width is a multiple of 128 (None if impossible)."""
    target = max(1, 128 // max(dh, 1))
    for hpg in range(min(n_head, target), 0, -1):
        if n_head % hpg == 0 and (hpg * dh) % 128 == 0:
            return hpg
    return None


def mha_attention(qkv, n_head, causal):
    """qkv: (B, L, 3D) packed projections -> (B, L, D) attention output."""
    B, L, threeD = qkv.shape
    D = threeD // 3
    dh = D // n_head
    scale = 1.0 / math.sqrt(dh)

    hpg = _head_group(n_head, dh)
    if hpg is not None:
        # Split path: q/k/v are 128-lane-aligned head-group tiles sliced out of
        # the packed slab by the BlockSpec index maps (three views of one array).
        gd = hpg * dh
        ng = n_head // hpg
        q_spec = pl.BlockSpec((1, L, gd), lambda b, g: (b, 0, g))
        k_spec = pl.BlockSpec((1, L, gd), lambda b, g: (b, 0, ng + g))
        v_spec = pl.BlockSpec((1, L, gd), lambda b, g: (b, 0, 2 * ng + g))
        out_spec = pl.BlockSpec((1, L, gd), lambda b, g: (b, 0, g))
        offs = (0, 0, 0)
        grid = (B, ng)
    else:
        # TODO(synk): head width not 128-lane groupable; fall back to whole-slab
        # blocks (redundant q/k/v DMAs of the same slab — correctness only).
        hpg, ng = n_head, 1
        slab = pl.BlockSpec((1, L, threeD), lambda b, g: (b, 0, 0))
        q_spec = k_spec = v_spec = slab
        out_spec = pl.BlockSpec((1, L, D), lambda b, g: (b, 0, 0))
        offs = (0, D, 2 * D)
        grid = (B, 1)

    return pl.pallas_call(
        functools.partial(_attn_kernel, hpg=hpg, dh=dh, offs=offs,
                          scale=scale, causal=causal),
        out_shape=jax.ShapeDtypeStruct((B, L, D), qkv.dtype),
        grid=grid,
        in_specs=[q_spec, k_spec, v_spec],
        out_specs=out_spec,
        compiler_params=pltpu.CompilerParams(
            dimension_semantics=("parallel", "parallel"),
            vmem_limit_bytes=_VMEM_LIMIT),
    )(qkv, qkv, qkv)


# =============== fused ln_final + normalize(dim=seq) + mean(dim=seq) ===============

def _tail_kernel(x_ref, g_ref, b_ref, o_ref, *, eps):
    x = x_ref[0].astype(jnp.float32)                           # (L, D)
    mu = jnp.mean(x, axis=-1, keepdims=True)
    var = jnp.mean(jnp.square(x - mu), axis=-1, keepdims=True)
    y = (x - mu) * jax.lax.rsqrt(var + eps) * g_ref[...] + b_ref[...]
    # features / features.norm(dim=1, keepdim=True)  (norm over the seq axis)
    ssq = jnp.sum(y * y, axis=0, keepdims=True)                # (1, D)
    y = y * jax.lax.rsqrt(ssq + 1e-12)                         # eps guards zero norm
    o_ref[0] = jnp.mean(y, axis=0, keepdims=True).astype(o_ref.dtype)


def encode_tail(x, g, b, eps=1e-5):
    """ln_final + per-column L2 normalize over seq + mean over seq, fused."""
    B, L, D = x.shape
    out = pl.pallas_call(
        functools.partial(_tail_kernel, eps=eps),
        out_shape=jax.ShapeDtypeStruct((B, 1, D), x.dtype),
        grid=(B,),
        in_specs=[pl.BlockSpec((1, L, D), lambda bi: (bi, 0, 0)),
                  pl.BlockSpec((1, D), lambda bi: (0, 0)),
                  pl.BlockSpec((1, D), lambda bi: (0, 0))],
        out_specs=pl.BlockSpec((1, 1, D), lambda bi: (bi, 0, 0)),
        compiler_params=pltpu.CompilerParams(
            dimension_semantics=("parallel",), vmem_limit_bytes=_VMEM_LIMIT),
    )(x, g.reshape(1, D), b.reshape(1, D))
    return out.reshape(B, D)


# ============================ scaled logits ============================

def _scaled_logits_kernel(s_ref, a_ref, b_ref, o_ref):
    logits = jax.lax.dot_general(a_ref[...], b_ref[...], (((1,), (1,)), ((), ())),
                                 preferred_element_type=jnp.float32)
    o_ref[...] = (s_ref[0] * logits).astype(o_ref.dtype)


def scaled_logits(a, b, scale1):
    """logit_scale * a @ b.T  with a:(B1,D), b:(B2,D), scale1:(1,) in SMEM."""
    B1, D = a.shape
    B2, _ = b.shape
    return pl.pallas_call(
        _scaled_logits_kernel,
        out_shape=jax.ShapeDtypeStruct((B1, B2), a.dtype),
        grid=(1,),
        in_specs=[pl.BlockSpec(memory_space=pltpu.MemorySpace.SMEM),
                  pl.BlockSpec((B1, D), lambda i: (0, 0)),
                  pl.BlockSpec((B2, D), lambda i: (0, 0))],
        out_specs=pl.BlockSpec((B1, B2), lambda i: (0, 0)),
        compiler_params=pltpu.CompilerParams(
            dimension_semantics=("arbitrary",), vmem_limit_bytes=_VMEM_LIMIT),
    )(scale1, a, b)


# ======================== Transformer building blocks ========================

def residual_attention_block(x, p, n_head, act_kind, causal):
    """Pre-norm residual block: x + attn(ln1(x)); x + mlp(ln2(x)). Fused kernels."""
    B, L, D = x.shape
    x2 = x.reshape(B * L, D)

    # ln1 + QKV projection, fused (heads sliced by attention BlockSpecs).
    qkv = fused_linear(x2, p["w_qkv"], p["b_qkv"],
                       ln_g=p["ln1_g"], ln_b=p["ln1_b"])
    a = mha_attention(qkv.reshape(B, L, 3 * D), n_head, causal)     # (B, L, D)

    # attention out-projection + residual add, fused
    x2 = fused_linear(a.reshape(B * L, D), p["w_out"], p["b_out"], residual=x2)

    # ln2 + MLP fc + activation, fused
    h = fused_linear(x2, p["w_fc"], p["b_fc"],
                     ln_g=p["ln2_g"], ln_b=p["ln2_b"], act=act_kind)
    # MLP proj (K-tiled) + residual add, fused
    x2 = fused_linear(h, p["w_proj"], p["b_proj"], residual=x2)
    return x2.reshape(B, L, D)


def text_transformer_forward(tokens, p):
    """nn.Embedding + pos + causal transformer. Returns pre-ln_final (B, L, D)."""
    x = jnp.take(p["tok_emb"], tokens, axis=0) + p["pos"]    # gather = XLA glue
    for blk in p["blocks"]:
        x = residual_attention_block(x, blk, p["n_head"], "quick_gelu", causal=True)
    return x
    # NOTE: the (x @ text_projection) second output is discarded by CLIP2.forward.


def tabular_transformer_forward(vals, p):
    """nn.Linear(1, width) token embedding + pos + causal transformer (pre-ln_final)."""
    x = vals * p["w_tok"].reshape(1, 1, -1) + p["b_tok"].reshape(1, 1, -1)
    x = x + p["pos"]
    for blk in p["blocks"]:
        x = residual_attention_block(x, blk, p["n_head"], "quick_gelu", causal=True)
    return x


def vit_forward(image, p):
    """MONAI-style ViT encoder: conv patch embed (== linear over flattened
    patches), pos embed, pre-norm transformer blocks with GELU MLP."""
    # TODO(synk): `ViT` class is not defined in the provided source; a standard
    # MONAI-style 3-D ViT encoder (classification=False) is implemented here.
    B, C, Dd, Hh, Ww = image.shape
    ps = p["patch"]
    gd, gh, gw = Dd // ps, Hh // ps, Ww // ps
    x = image.reshape(B, C, gd, ps, gh, ps, gw, ps)
    x = x.transpose(0, 2, 4, 6, 1, 3, 5, 7).reshape(B, gd * gh * gw, C * ps ** 3)
    n_p, pd = x.shape[1], x.shape[2]
    D = p["w_patch"].shape[1]
    x = fused_linear(x.reshape(B * n_p, pd), p["w_patch"], p["b_patch"])
    x = x.reshape(B, n_p, D) + p["pos"]
    for blk in p["blocks"]:
        x = residual_attention_block(x, blk, p["n_head"], "gelu", causal=False)
    return x


# ================================ CLIP2 =================================

def clip2_forward(params, data):
    image, bbox, radiomics, clinical = (
        data["image"], data["bbox"], data["radiomics"], data["clinical"])

    image_seq = vit_forward(image, params["vit"])                      # (B, Np, D)
    bbox_seq = text_transformer_forward(bbox, params["bbox"])          # (B, Lb, D)
    rad_seq = tabular_transformer_forward(radiomics[..., None], params["rad"])
    clin_seq = tabular_transformer_forward(clinical[..., None], params["clin"])

    # fused ln_final + normalize(dim=seq) + mean(dim=seq) per tower
    image_features = encode_tail(image_seq, params["vit"]["lnf_g"], params["vit"]["lnf_b"])
    bbox_features = encode_tail(bbox_seq, params["bbox"]["lnf_g"], params["bbox"]["lnf_b"])
    radiomics_features = encode_tail(rad_seq, params["rad"]["lnf_g"], params["rad"]["lnf_b"])
    clinical_features = encode_tail(clin_seq, params["clin"]["lnf_g"], params["clin"]["lnf_b"])

    scale1 = jnp.exp(params["logit_scale"]).reshape(1)
    logits_image_bbox = scaled_logits(image_features, bbox_features, scale1)
    logits_image_radiomics = scaled_logits(image_features, radiomics_features, scale1)
    logits_image_clinical = scaled_logits(image_features, clinical_features, scale1)

    logits = [[logits_image_bbox, logits_image_bbox.T],
              [logits_image_radiomics, logits_image_radiomics.T],
              [logits_image_clinical, logits_image_clinical.T]]
    feats = [image_features, bbox_features, radiomics_features, clinical_features]
    return logits, feats


# =========================== Parameter init ===========================

def init_blocks(key, d, mlp, layers):
    attn_std = d ** (-0.5)
    proj_std = (d ** (-0.5)) * ((2 * layers) ** (-0.5))
    fc_std = (2 * d) ** (-0.5)
    blocks = []
    for lk in jax.random.split(key, layers):
        ks = jax.random.split(lk, 4)
        blocks.append(dict(
            ln1_g=jnp.ones((d,), jnp.float32), ln1_b=jnp.zeros((d,), jnp.float32),
            w_qkv=attn_std * jax.random.normal(ks[0], (d, 3 * d), jnp.float32),
            b_qkv=jnp.zeros((3 * d,), jnp.float32),
            w_out=proj_std * jax.random.normal(ks[1], (d, d), jnp.float32),
            b_out=jnp.zeros((d,), jnp.float32),
            ln2_g=jnp.ones((d,), jnp.float32), ln2_b=jnp.zeros((d,), jnp.float32),
            w_fc=fc_std * jax.random.normal(ks[2], (d, mlp), jnp.float32),
            b_fc=jnp.zeros((mlp,), jnp.float32),
            w_proj=proj_std * jax.random.normal(ks[3], (mlp, d), jnp.float32),
            b_proj=jnp.zeros((d,), jnp.float32),
        ))
    return blocks


def init_clip2(key, *, d, n_head, layers, embed_dim, img_size, patch,
               ctx_len, vocab, rad_len, clin_len, vit_mlp):
    ks = jax.random.split(key, 8)

    gd, gh, gw = (s // patch for s in img_size)
    n_patches = gd * gh * gw
    patch_dim = patch ** 3  # in_channels = 1

    vit = dict(
        patch=patch, n_head=n_head,
        w_patch=0.02 * jax.random.normal(ks[0], (patch_dim, d), jnp.float32),
        b_patch=jnp.zeros((d,), jnp.float32),
        pos=0.01 * jax.random.normal(ks[1], (n_patches, d), jnp.float32),
        blocks=init_blocks(ks[2], d, vit_mlp, layers),
        lnf_g=jnp.ones((d,), jnp.float32), lnf_b=jnp.zeros((d,), jnp.float32),
    )

    def make_text(key, seq_len, is_embedding, vocab_size):
        k0, k1, k2 = jax.random.split(key, 3)
        p = dict(
            n_head=n_head,
            pos=0.01 * jax.random.normal(k1, (seq_len, d), jnp.float32),
            blocks=init_blocks(k2, d, 4 * d, layers),
            lnf_g=jnp.ones((d,), jnp.float32), lnf_b=jnp.zeros((d,), jnp.float32),
        )
        if is_embedding:
            p["tok_emb"] = 0.02 * jax.random.normal(k0, (vocab_size, d), jnp.float32)
        else:
            p["w_tok"] = 0.02 * jax.random.normal(k0, (d,), jnp.float32)
            p["b_tok"] = jnp.zeros((d,), jnp.float32)
        return p

    return dict(
        vit=vit,
        bbox=make_text(ks[3], ctx_len, True, vocab),
        rad=make_text(ks[4], rad_len, False, rad_len),
        clin=make_text(ks[5], clin_len, False, clin_len),
        logit_scale=jnp.array(math.log(1.0 / 0.07), jnp.float32),
    )


# ================================ main ================================

if __name__ == "__main__":
    # Small, self-consistent shapes (scaled-down CLIP2).  D=128 keeps head
    # groups 128-lane aligned so the optimized attention path is exercised.
    B = 2
    D = 128         # hidden_size / transformer_width
    HEADS = 4       # head_dim = 32 -> one 4-head (128-lane) group per batch
    LAYERS = 2
    EMBED = 32
    IMG = (8, 8, 8)
    PATCH = 4
    CTX = 8         # bbox context length
    VOCAB = 32
    RAD_LEN = 12
    CLIN_LEN = 6
    VIT_MLP = 4 * D

    key = jax.random.PRNGKey(0)
    kp, ki, kb, kr, kc = jax.random.split(key, 5)

    params = init_clip2(kp, d=D, n_head=HEADS, layers=LAYERS, embed_dim=EMBED,
                        img_size=IMG, patch=PATCH, ctx_len=CTX, vocab=VOCAB,
                        rad_len=RAD_LEN, clin_len=CLIN_LEN, vit_mlp=VIT_MLP)

    data = dict(
        image=jax.random.normal(ki, (B, 1) + IMG, jnp.float32),
        bbox=jax.random.randint(kb, (B, CTX), 0, VOCAB, jnp.int32),
        radiomics=jax.random.normal(kr, (B, RAD_LEN), jnp.float32),
        clinical=jax.random.normal(kc, (B, CLIN_LEN), jnp.float32),
    )

    logits, feats = clip2_forward(params, data)
    jax.block_until_ready((logits, feats))

    # sanity on shapes
    assert logits[0][0].shape == (B, B) and logits[0][1].shape == (B, B)
    assert all(f.shape == (B, D) for f in feats)
    print("KERNEL_OK")
</pallas_src>

<mosaic_0001>
module attributes {stable_mosaic.version = 11 : i64} {
  func.func @_fused_linear_kernel(%arg0: i32, %arg1: i32, %arg2: i32, %arg3: memref<16x64xf32, #tpu.memory_space<vmem>>, %arg4: memref<64x128xf32, #tpu.memory_space<vmem>>, %arg5: memref<1x128xf32, #tpu.memory_space<vmem>>, %arg6: memref<16x128xf32, #tpu.memory_space<vmem>>, %arg7: memref<16x128xf32, #tpu.memory_space<vmem>>) attributes {dimension_semantics = [#tpu.dimension_semantics<parallel>, #tpu.dimension_semantics<arbitrary>, #tpu.dimension_semantics<arbitrary>], iteration_bounds = array<i64: 1, 1, 1>, scalar_prefetch = 0 : i64, scratch_operands = 1 : i64, tpu.core_type = #tpu.core_type<tc>, window_params = [{transform_indices = @transform_0, window_bounds = array<i64: 16, 64>}, {transform_indices = @transform_1, window_bounds = array<i64: 64, 128>}, {transform_indices = @transform_2, window_bounds = array<i64: 1, 128>}, {transform_indices = @transform_3, window_bounds = array<i64: 16, 128>}]} {
    %c0 = arith.constant 0 : index
    %c0_0 = arith.constant 0 : index
    %0 = vector.load %arg3[%c0, %c0_0] : memref<16x64xf32, #tpu.memory_space<vmem>>, vector<16x64xf32>
    %c0_i32 = arith.constant 0 : i32
    %1 = arith.cmpi eq, %arg2, %c0_i32 : i32
    %2 = arith.extui %1 : i1 to i32
    %c0_i32_1 = arith.constant 0 : i32
    %3 = arith.cmpi ne, %2, %c0_i32_1 : i32
    scf.if %3 {
      %cst_10 = arith.constant 0.000000e+00 : f32
      %12 = vector.broadcast %cst_10 : f32 to vector<16x128xf32>
      %c0_11 = arith.constant 0 : index
      %c0_12 = arith.constant 0 : index
      %13 = vector.load %arg7[%c0_11, %c0_12] : memref<16x128xf32, #tpu.memory_space<vmem>>, vector<16x128xf32>
      tpu.vector_store %arg7[%c0_11, %c0_12], %12 {strides = array<i32>} : memref<16x128xf32, #tpu.memory_space<vmem>>, vector<16x128xf32>,
    } else {
    }
    %c0_2 = arith.constant 0 : index
    %c0_3 = arith.constant 0 : index
    %4 = vector.load %arg7[%c0_2, %c0_3] : memref<16x128xf32, #tpu.memory_space<vmem>>, vector<16x128xf32>
    %c0_4 = arith.constant 0 : index
    %c0_5 = arith.constant 0 : index
    %5 = vector.load %arg4[%c0_4, %c0_5] : memref<64x128xf32, #tpu.memory_space<vmem>>, vector<64x128xf32>
    %cst = arith.constant dense<0.000000e+00> : vector<16x128xf32>
    %6 = tpu.matmul %0, %5, %cst {dimension_numbers = #tpu.dot_dimension_numbers<[1], [0], [0], [1], [0, 0, 1, 1], [], []>} : vector<16x64xf32>, vector<64x128xf32>, vector<16x128xf32> -> vector<16x128xf32>
    %7 = arith.addf %4, %6 : vector<16x128xf32>
    %c0_6 = arith.constant 0 : index
    %c0_7 = arith.constant 0 : index
    %8 = vector.load %arg7[%c0_6, %c0_7] : memref<16x128xf32, #tpu.memory_space<vmem>>, vector<16x128xf32>
    tpu.vector_store %arg7[%c0_6, %c0_7], %7 {strides = array<i32>} : memref<16x128xf32, #tpu.memory_space<vmem>>, vector<16x128xf32>,
    %c0_i32_8 = arith.constant 0 : i32
    %9 = arith.cmpi eq, %arg2, %c0_i32_8 : i32
    %10 = arith.extui %9 : i1 to i32
    %c0_i32_9 = arith.constant 0 : i32
    %11 = arith.cmpi ne, %10, %c0_i32_9 : i32
    scf.if %11 {
      %c0_10 = arith.constant 0 : index
      %c0_11 = arith.constant 0 : index
      %12 = vector.load %arg7[%c0_10, %c0_11] : memref<16x128xf32, #tpu.memory_space<vmem>>, vector<16x128xf32>
      %c0_12 = arith.constant 0 : index
      %c0_13 = arith.constant 0 : index
      %13 = vector.load %arg5[%c0_12, %c0_13] : memref<1x128xf32, #tpu.memory_space<vmem>>, vector<1x128xf32>
      %14 = vector.broadcast %13 : vector<1x128xf32> to vector<16x128xf32>
      %15 = arith.addf %12, %14 : vector<16x128xf32>
      %c0_14 = arith.constant 0 : index
      %c0_15 = arith.constant 0 : index
      %16 = vector.load %arg6[%c0_14, %c0_15] : memref<16x128xf32, #tpu.memory_space<vmem>>, vector<16x128xf32>
      tpu.vector_store %arg6[%c0_14, %c0_15], %15 {strides = array<i32>} : memref<16x128xf32, #tpu.memory_space<vmem>>, vector<16x128xf32>,
    } else {
    }
    return
  }
  func.func @transform_0(%arg0: i32, %arg1: i32, %arg2: i32) -> (i32, i32) {
    %c0_i32 = arith.constant 0 : i32
    return %arg0, %arg2 : i32, i32
  }
  func.func @transform_1(%arg0: i32, %arg1: i32, %arg2: i32) -> (i32, i32) {
    %c0_i32 = arith.constant 0 : i32
    return %arg2, %arg1 : i32, i32
  }
  func.func @transform_2(%arg0: i32, %arg1: i32, %arg2: i32) -> (i32, i32) {
    %c0_i32 = arith.constant 0 : i32
    %c0_i32_0 = arith.constant 0 : i32
    return %c0_i32, %arg1 : i32, i32
  }
  func.func @transform_3(%arg0: i32, %arg1: i32, %arg2: i32) -> (i32, i32) {
    %c0_i32 = arith.constant 0 : i32
    return %arg0, %arg1 : i32, i32
  }
}

</mosaic_0001>

<bundles_post_ra>
// kernel: tpu_custom_call.1
= control target key start
LH: loop header
LB: loop body
LE: loop exit
PB: predicated region body
PF: predicated region fallthrough
CT: control target
= control target key end

     0   :  { %8 = vsyncpa [#allocation4], 0  ;;  %s381_s0 = inlined_call_operand.hbm [shape: f32[16,64], index: 0, kind: input, shape index: {}]   ;;  %s382_s1 = inlined_call_operand.hbm [shape: f32[64,128], index: 1, kind: input, shape index: {}]   ;;  %s383_s2 = inlined_call_operand.vmem [shape: f32[1,128], index: 2, kind: input, shape index: {}]   ;;  %s384_s3 = inlined_call_operand.hbm [shape: f32[16,128], index: 3, kind: output, shape index: {}]  }
   0x1   :  { %9 = vsyncpa [#allocation7], 0 }
   0x2   :  { %10 = vsyncpa [#allocation5], 0  ;;  %s306_s12 = smov [#allocation3]   ;;  %s234_s16 = scalar_lea.hbm %s381_s0, 256 }
   0x3   :  { %s16_s13 = sshll.u32 %s306_s12, 4  ;;  %p235_p0 = scmp.ne.s32.totalorder %s381_s0, %s234_s16  ;;  %s17_s13 = int_to_ptr.vmem [resolvable:$true] %s16_s13 }
   0x4   :  { %p238_p1 = scmp.lt.u32.totalorder %s234_s16, %s381_s0 }
   0x6   :  { %p240_p2 = pnand %p238_p1, %p235_p0 }
   0x8   :  { %243 = shalt.err (!%p240_p2)
}
   0x9   :  { %s244_s21 = scalar_lea.vmem %s17_s13, 256  ;;  %p249_p4 = scmp.lt.s32.totalorder %s17_s13, %s17_s13 }
   0xa   :  { %p245_p3 = scmp.ne.s32.totalorder %s17_s13, %s244_s21  ;;  %p250_p5 = scmp.lt.s32.totalorder %s244_s21, %s244_s21 }
   0xc   :  { %p251_p6 = por %p250_p5, %p249_p4 }
   0xe   :  { %p252_p7 = pnand %p251_p6, %p245_p3 }
  0x10   :  { %255 = shalt.err (!%p252_p7)
}
  0x11   :  { %s307_s22 = smov 128   ;;  %s308_s23 = smov 8  }
  0x12   :  { %22 = dma.hbm_to_vmem [thread:$0]  %s381_s0, 256, %s17_s13, [#allocation4], %s307_s22, %s307_s22, %s308_s23  }
  0x13   :  { %s309_s26 = smov [#allocation6]   ;;  %s256_s30 = scalar_lea.hbm %s382_s1, 1024 }
  0x14   :  { %s28_s27 = sshll.u32 %s309_s26, 4  ;;  %p257_p8 = scmp.ne.s32.totalorder %s382_s1, %s256_s30  ;;  %s29_s27 = int_to_ptr.vmem [resolvable:$true] %s28_s27 }
  0x15   :  { %p260_p9 = scmp.lt.u32.totalorder %s256_s30, %s382_s1 }
  0x17   :  { %p262_p10 = pnand %p260_p9, %p257_p8 }
  0x19   :  { %265 = shalt.err (!%p262_p10)
}
  0x1a   :  { %s266_s8 = scalar_lea.vmem %s29_s27, 1024  ;;  %p271_p12 = scmp.lt.s32.totalorder %s29_s27, %s29_s27 }
  0x1b   :  { %p267_p11 = scmp.ne.s32.totalorder %s29_s27, %s266_s8  ;;  %p272_p13 = scmp.lt.s32.totalorder %s266_s8, %s266_s8 }
  0x1d   :  { %p273_p0 = por %p272_p13, %p271_p12 }
  0x1f   :  { %p274_p1 = pnand %p273_p0, %p267_p11 }
  0x21   :  { %277 = shalt.err (!%p274_p1)
}
  0x22   :  { %34 = dma.hbm_to_vmem [thread:$0]  %s382_s1, 1024, %s29_s27, [#allocation7], %s307_s22, %s307_s22, %s308_s23  }
  0x23   :  { %300 = dma.done.wait [#allocation4], 256  }
  0x24   :  { %301 = vsyncadd [#allocation4], 4294967040 }
  0x25   :  { %302 = dma.done.wait [#allocation7], 1024  }
  0x26   :  { %303 = vsyncadd [#allocation7], 4294966272  ;;  %v53_v0 = vld [vmem:[#allocation6] sm:$0xff]  ;;  %v54_v1 = vld [vmem:[#allocation6 + $0x8] sm:$0xff]  ;;  %vm61_vm0 = vcmask 523264   ;;  %s310_s11 = smov [#allocation8]  }
  0x27   :  { %v55_v2 = vld [vmem:[#allocation6 + $0x10] sm:$0xff]  ;;  %v213_v3 = vpack.c.bf16 %v54_v1, %v53_v0  ;;  %v56_v4 = vld [vmem:[#allocation6 + $0x18] sm:$0xff]  ;;  %v57_v6 = vld [vmem:[#allocation6 + $0x20] sm:$0xff]  ;;  %s168_s12 = sshll.u32 %s310_s11, 4  ;;  %s169_s12 = int_to_ptr.vmem [resolvable:$true] %s168_s12 }
  0x28   :  { %v217_v5 = vpack.c.bf16 %v56_v4, %v55_v2  ;;  %v58_v7 = vld [vmem:[#allocation6 + $0x28] sm:$0xff]  ;;  %v43_v8 = vld [vmem:[#allocation3] sm:$0xff]  ;;  %v60_v11 = vld [vmem:[#allocation6 + $0x38] sm:$0xff]  ;;  %s278_s13 = scalar_lea.vmem %s169_s12, 256  ;;  %p283_p3 = scmp.lt.s32.totalorder %s169_s12, %s169_s12 }
  0x29   :  { %214 = vmatprep.subr.bf16.mxu0 %v213_v3  ;;  %210 = vmatprep.mubr.msk.f32.mxu0 %vm61_vm0, %v43_v8  ;;  %v221_v9 = vpack.c.bf16 %v58_v7, %v57_v6  ;;  %v59_v10 = vld [vmem:[#allocation6 + $0x30] sm:$0xff]  ;;  %v44_v13 = vld [vmem:[#allocation3 + $0x8] sm:$0xff]  ;;  %p279_p2 = scmp.ne.s32.totalorder %s169_s12, %s278_s13  ;;  %p284_p4 = scmp.lt.s32.totalorder %s278_s13, %s278_s13 }
  0x2a   :  { %216 = vmatpush3.bf16.msra.mxu0 %v213_v3  ;;  %v225_v12 = vpack.c.bf16 %v60_v11, %v59_v10  ;;  %v183_v14 = vld [vmem:[%s383_s2] ss:$0 sm:$0xff] }
  0x2b   :  { %218 = vmatprep.subr.bf16.mxu0 %v217_v5  ;;  %p285_p5 = por %p284_p4, %p283_p3 }
  0x2d   :  { %p286_p6 = pnand %p285_p5, %p279_p2 }
  0x2e   :  { %220 = vmatpush3.bf16.msra.mxu0 %v217_v5 }
  0x2f   :  { %222 = vmatprep.subr.bf16.mxu0 %v221_v9 }
  0x32   :  { %224 = vmatpush3.bf16.msra.mxu0 %v221_v9 }
  0x33   :  { %226 = vmatprep.subr.bf16.mxu0 %v225_v12 }
  0x36   :  { %228 = vmatpush3.bf16.msra.mxu0 %v225_v12 }
  0x39   :  { %211 = vmatmul.mubr.msk.f32.vlgmr.msra.gmra.mrb[0].mxu0 %vm61_vm0, %v44_v13 }
 0x10c   :  { %v212_v15 = vpop.f32.mrb[0].mxu0 }
 0x10d   :  { %v160_v16 = vadd.f32 %v212_v15, %v183_v14  ;;  %v134_v17 = vpop.f32.mrb[1].mxu0 }
 0x10e   :  { %v159_v18 = vadd.f32 %v183_v14, %v134_v17 }
 0x10f   :  { %162 = vst [vmem:[#allocation8 + $0x8] sm:$0xff] %v160_v16 }
 0x110   :  { %161 = vst [vmem:[#allocation8] sm:$0xff] %v159_v18 }
 0x111   :  { %289 = shalt.err (!%p286_p6)
}
 0x112   :  { %s290_s2 = scalar_lea.hbm %s384_s3, 256 }
 0x113   :  { %p291_p7 = scmp.ne.s32.totalorder %s384_s3, %s290_s2  ;;  %p294_p8 = scmp.lt.u32.totalorder %s290_s2, %s384_s3 }
 0x115   :  { %p296_p9 = pnand %p294_p8, %p291_p7 }
 0x117   :  { %299 = shalt.err (!%p296_p9)
}
 0x118   :  { %174 = dma.vmem_to_hbm [thread:$0]  %s169_s12, 256, %s384_s3, [#allocation5], %s307_s22, %s307_s22, %s308_s23  }
 0x119   :  { %304 = dma.done.wait [#allocation5], 256  }
 0x11a   :  { %305 = vsyncadd [#allocation5], 4294967040 }
 0x11b   :  { %178 = vsyncpa [#allocation4], 1 }
 0x11c   :  { %179 = vsyncpa [#allocation7], 1 }
 0x11d   :  { %180 = vsyncpa [#allocation5], 1 }

</bundles_post_ra>
